<compile_context>
chip_gen: v7x
topology: tpu7x:2x2x1
jax: 0.10.0
libtpu: 0.0.40
codegen_flags: <defaults>
</compile_context>

<pallas_src>
import functools

import jax
import jax.numpy as jnp
from jax import lax
from jax.experimental import pallas as pl
from jax.experimental.pallas import tpu as pltpu

_VMEM_LIMIT = 64 * 1024 * 1024


# ---------------------------------------------------------------------------
# Fused Linear (+ bias, + optional ReLU) kernel
# ---------------------------------------------------------------------------
def _linear_kernel(x_ref, w_ref, b_ref, o_ref, acc_ref, *, activation):
    @pl.when(pl.program_id(2) == 0)
    def _():
        acc_ref[...] = jnp.zeros_like(acc_ref)

    acc_ref[...] += jnp.dot(x_ref[...], w_ref[...],
                            preferred_element_type=jnp.float32)

    @pl.when(pl.program_id(2) == pl.num_programs(2) - 1)
    def _():
        out = acc_ref[...] + b_ref[...].astype(jnp.float32)
        if activation == "relu":
            out = jnp.maximum(out, 0.0)
        o_ref[...] = out.astype(o_ref.dtype)


def _pick(dim, pref):
    return pref if dim % pref == 0 else dim


def linear(x, w, b, *, activation=None):
    """x: (M, K), w: (K, N), b: (N,) -> (M, N), optionally fused ReLU."""
    M, K = x.shape
    Kw, N = w.shape
    assert K == Kw and b.shape == (N,)

    tm = _pick(M, 128)
    tn = _pick(N, 128)
    tk = 256 if K % 256 == 0 else _pick(K, 128)
    grid = (M // tm, N // tn, K // tk)

    cost = pl.CostEstimate(
        flops=2 * M * N * K,
        transcendentals=0,
        bytes_accessed=(M * K + K * N + M * N) * x.dtype.itemsize)

    return pl.pallas_call(
        functools.partial(_linear_kernel, activation=activation),
        out_shape=jax.ShapeDtypeStruct((M, N), x.dtype),
        grid_spec=pltpu.PrefetchScalarGridSpec(
            num_scalar_prefetch=0,
            grid=grid,
            in_specs=[
                pl.BlockSpec((tm, tk), lambda i, j, k: (i, k)),
                pl.BlockSpec((tk, tn), lambda i, j, k: (k, j)),
                pl.BlockSpec((1, tn), lambda i, j, k: (0, j)),
            ],
            out_specs=pl.BlockSpec((tm, tn), lambda i, j, k: (i, j)),
            scratch_shapes=[pltpu.VMEM((tm, tn), jnp.float32)]),
        compiler_params=pltpu.CompilerParams(
            dimension_semantics=("parallel", "parallel", "arbitrary"),
            vmem_limit_bytes=_VMEM_LIMIT),
        cost_estimate=cost,
    )(x, w, b.reshape(1, N))


# ---------------------------------------------------------------------------
# Fused depthwise 3x3 conv (pad=1, groups=C) + bias + GELU kernel
# ---------------------------------------------------------------------------
def _dwconv_kernel(x_ref, w_ref, b_ref, o_ref, xpad_ref, *, apply_gelu):
    # x_ref   : (1, H, W, CB)     unpadded input tile
    # w_ref   : (3, 3, CB)        depthwise taps, channel-last
    # b_ref   : (1, CB)           bias
    # o_ref   : (1, H, W, CB)     output tile
    # xpad_ref: (H+2, W+2, CB) f32 VMEM scratch (zero-halo'd tile)
    H, W, CB = o_ref.shape[1], o_ref.shape[2], o_ref.shape[3]

    # Build the 1-pixel zero halo in VMEM (no HBM-side padding pass).
    xpad_ref[0:1, :, :] = jnp.zeros((1, W + 2, CB), jnp.float32)
    xpad_ref[H + 1:H + 2, :, :] = jnp.zeros((1, W + 2, CB), jnp.float32)
    xpad_ref[:, 0:1, :] = jnp.zeros((H + 2, 1, CB), jnp.float32)
    xpad_ref[:, W + 1:W + 2, :] = jnp.zeros((H + 2, 1, CB), jnp.float32)
    xpad_ref[1:H + 1, 1:W + 1, :] = x_ref[0].astype(jnp.float32)

    # Hoisted casts; bias folded into the accumulator init.
    w = w_ref[...].astype(jnp.float32)                               # (3,3,CB)
    acc = jnp.broadcast_to(
        b_ref[...].astype(jnp.float32).reshape(1, 1, CB), (H, W, CB))

    # 3x3 depthwise conv = 9 shifted MACs; each tap is a direct static-offset
    # VMEM load from the padded scratch ref (no materialized padded value).
    for dy in range(3):
        for dx in range(3):
            acc = acc + (xpad_ref[dy:dy + H, dx:dx + W, :]
                         * w[dy, dx][None, None, :])

    if apply_gelu:
        # tanh-approx GELU (identical to jax.nn.gelu(approximate=True)).
        # TODO(synk): nn.GELU default is the exact erf form; the tanh
        # approximation differs by <~1e-3.
        c = 0.7978845608028654  # sqrt(2/pi)
        acc = 0.5 * acc * (1.0 + jnp.tanh(c * (acc + 0.044715 * acc * acc * acc)))

    o_ref[0] = acc.astype(o_ref.dtype)


def dwconv_gelu(x, H, W, weight_hwc, bias, *, apply_gelu=True):
    """Depthwise 3x3 conv (stride 1, pad 1, groups=C) + bias (+ fused GELU).

    x: (B, N, C) with N == H*W.
    weight_hwc: (3, 3, C)  — PyTorch's (C,1,3,3) weight stored channel-last,
                i.e. w.reshape(C,3,3).transpose(1,2,0).
    bias: (C,).
    """
    B, N, C = x.shape
    assert N == H * W
    assert weight_hwc.shape == (3, 3, C)
    assert bias.shape == (C,)

    # Channel block of 128 keeps the lane dim dense (unmasked stores) and
    # bounds VMEM per tile; fall back to full C if it does not divide evenly.
    CB = 128 if C % 128 == 0 else C
    nC = C // CB

    # (B,N,C) -> (B,H,W,C): same element order as NCHW view + flatten(2).
    xi = x.reshape(B, H, W, C)

    cost = pl.CostEstimate(
        flops=18 * B * H * W * C,
        transcendentals=(B * H * W * C) if apply_gelu else 0,
        bytes_accessed=2 * B * H * W * C * x.dtype.itemsize
        + 10 * C * x.dtype.itemsize)

    out = pl.pallas_call(
        functools.partial(_dwconv_kernel, apply_gelu=apply_gelu),
        out_shape=jax.ShapeDtypeStruct((B, H, W, C), x.dtype),
        grid_spec=pltpu.PrefetchScalarGridSpec(
            num_scalar_prefetch=0,
            grid=(B, nC),
            in_specs=[
                pl.BlockSpec((1, H, W, CB), lambda b, c: (b, 0, 0, c)),
                pl.BlockSpec((3, 3, CB), lambda b, c: (0, 0, c)),
                pl.BlockSpec((1, CB), lambda b, c: (0, c)),
            ],
            out_specs=pl.BlockSpec((1, H, W, CB), lambda b, c: (b, 0, 0, c)),
            scratch_shapes=[pltpu.VMEM((H + 2, W + 2, CB), jnp.float32)]),
        compiler_params=pltpu.CompilerParams(
            dimension_semantics=("parallel", "parallel"),
            vmem_limit_bytes=_VMEM_LIMIT),
        cost_estimate=cost,
    )(xi, weight_hwc, bias.reshape(1, C))
    # TODO(synk): for very large H*W on v7x (64 MiB VMEM), add a halo-aware
    # row-block grid axis so each tile stays a few MiB.

    return out.reshape(B, N, C)


# ---------------------------------------------------------------------------
# Mlp forward = fc1 -> ReLU -> DWConv -> GELU -> fc2   (dropout p=0 -> id)
# ---------------------------------------------------------------------------
def mlp_forward(x, H, W, params):
    B, N, Cin = x.shape
    Chid = params["w1"].shape[1]
    Cout = params["w2"].shape[1]

    h = linear(x.reshape(B * N, Cin), params["w1"], params["b1"],
               activation="relu")
    h = dwconv_gelu(h.reshape(B, N, Chid), H, W,
                    params["w_dw"], params["b_dw"])
    y = linear(h.reshape(B * N, Chid), params["w2"], params["b2"],
               activation=None)
    return y.reshape(B, N, Cout)


def mlp_reference(x, H, W, params):
    """Pure-JAX reference of the same pipeline."""
    h = jnp.maximum(x @ params["w1"] + params["b1"], 0.0)
    B, N, C = h.shape
    hi = h.reshape(B, H, W, C)
    w = params["w_dw"].reshape(3, 3, 1, C)
    conv = lax.conv_general_dilated(
        hi, w, window_strides=(1, 1), padding=((1, 1), (1, 1)),
        dimension_numbers=("NHWC", "HWIO", "NHWC"), feature_group_count=C)
    conv = conv + params["b_dw"]
    g = jax.nn.gelu(conv, approximate=True).reshape(B, N, C)
    return g @ params["w2"] + params["b2"]


if __name__ == "__main__":
    # Small shapes consistent with Mlp: B=2, N=H*W=64 tokens, in=32,
    # hidden=128 (lane-dense for the depthwise conv), out=32.
    B, H, W = 2, 8, 8
    N = H * W
    in_features, hidden_features, out_features = 32, 128, 32

    key = jax.random.PRNGKey(0)
    kx, k1, k2, k3, k4, k5, k6 = jax.random.split(key, 7)
    x = jax.random.normal(kx, (B, N, in_features), dtype=jnp.float32)
    params = {
        "w1": jax.random.normal(k1, (in_features, hidden_features),
                                jnp.float32) * 0.05,
        "b1": jax.random.normal(k2, (hidden_features,), jnp.float32) * 0.05,
        # PyTorch depthwise weight (C,1,3,3) stored channel-last as (3,3,C).
        "w_dw": jax.random.normal(k3, (3, 3, hidden_features),
                                  jnp.float32) * 0.2,
        "b_dw": jax.random.normal(k4, (hidden_features,), jnp.float32) * 0.05,
        "w2": jax.random.normal(k5, (hidden_features, out_features),
                                jnp.float32) * 0.05,
        "b2": jax.random.normal(k6, (out_features,), jnp.float32) * 0.05,
    }

    out = mlp_forward(x, H, W, params)
    out = jax.block_until_ready(out)

    ref = mlp_reference(x, H, W, params)
    assert out.shape == (B, N, out_features)
    max_err = float(jnp.max(jnp.abs(out - ref)))
    assert jnp.allclose(out, ref, atol=2e-3, rtol=2e-3), (
        f"mismatch vs reference: max abs err {max_err}")

    print("KERNEL_OK")
</pallas_src>

<mosaic_0001>
module attributes {stable_mosaic.version = 11 : i64} {
  func.func @_linear_kernel(%arg0: i32, %arg1: i32, %arg2: i32, %arg3: memref<128x32xf32, #tpu.memory_space<vmem>>, %arg4: memref<32x128xf32, #tpu.memory_space<vmem>>, %arg5: memref<1x128xf32, #tpu.memory_space<vmem>>, %arg6: memref<128x128xf32, #tpu.memory_space<vmem>>, %arg7: memref<128x128xf32, #tpu.memory_space<vmem>>) attributes {dimension_semantics = [#tpu.dimension_semantics<parallel>, #tpu.dimension_semantics<parallel>, #tpu.dimension_semantics<arbitrary>], iteration_bounds = array<i64: 1, 1, 1>, scalar_prefetch = 0 : i64, scratch_operands = 1 : i64, tpu.core_type = #tpu.core_type<tc>, window_params = [{transform_indices = @transform_0, window_bounds = array<i64: 128, 32>}, {transform_indices = @transform_1, window_bounds = array<i64: 32, 128>}, {transform_indices = @transform_2, window_bounds = array<i64: 1, 128>}, {transform_indices = @transform_3, window_bounds = array<i64: 128, 128>}]} {
    %c0_i32 = arith.constant 0 : i32
    %0 = arith.cmpi eq, %arg2, %c0_i32 : i32
    %1 = arith.extui %0 : i1 to i32
    %c0_i32_0 = arith.constant 0 : i32
    %2 = arith.cmpi ne, %1, %c0_i32_0 : i32
    scf.if %2 {
      %cst_10 = arith.constant 0.000000e+00 : f32
      %12 = vector.broadcast %cst_10 : f32 to vector<128x128xf32>
      %c0_11 = arith.constant 0 : index
      %c0_12 = arith.constant 0 : index
      %13 = vector.load %arg7[%c0_11, %c0_12] : memref<128x128xf32, #tpu.memory_space<vmem>>, vector<128x128xf32>
      tpu.vector_store %arg7[%c0_11, %c0_12], %12 {strides = array<i32>} : memref<128x128xf32, #tpu.memory_space<vmem>>, vector<128x128xf32>,
    } else {
    }
    %c0 = arith.constant 0 : index
    %c0_1 = arith.constant 0 : index
    %3 = vector.load %arg7[%c0, %c0_1] : memref<128x128xf32, #tpu.memory_space<vmem>>, vector<128x128xf32>
    %c0_2 = arith.constant 0 : index
    %c0_3 = arith.constant 0 : index
    %4 = vector.load %arg3[%c0_2, %c0_3] : memref<128x32xf32, #tpu.memory_space<vmem>>, vector<128x32xf32>
    %c0_4 = arith.constant 0 : index
    %c0_5 = arith.constant 0 : index
    %5 = vector.load %arg4[%c0_4, %c0_5] : memref<32x128xf32, #tpu.memory_space<vmem>>, vector<32x128xf32>
    %cst = arith.constant dense<0.000000e+00> : vector<128x128xf32>
    %6 = tpu.matmul %4, %5, %cst {dimension_numbers = #tpu.dot_dimension_numbers<[1], [0], [0], [1], [0, 0, 1, 1], [], []>} : vector<128x32xf32>, vector<32x128xf32>, vector<128x128xf32> -> vector<128x128xf32>
    %7 = arith.addf %3, %6 : vector<128x128xf32>
    %c0_6 = arith.constant 0 : index
    %c0_7 = arith.constant 0 : index
    %8 = vector.load %arg7[%c0_6, %c0_7] : memref<128x128xf32, #tpu.memory_space<vmem>>, vector<128x128xf32>
    tpu.vector_store %arg7[%c0_6, %c0_7], %7 {strides = array<i32>} : memref<128x128xf32, #tpu.memory_space<vmem>>, vector<128x128xf32>,
    %c0_i32_8 = arith.constant 0 : i32
    %9 = arith.cmpi eq, %arg2, %c0_i32_8 : i32
    %10 = arith.extui %9 : i1 to i32
    %c0_i32_9 = arith.constant 0 : i32
    %11 = arith.cmpi ne, %10, %c0_i32_9 : i32
    scf.if %11 {
      %c0_10 = arith.constant 0 : index
      %c0_11 = arith.constant 0 : index
      %12 = vector.load %arg7[%c0_10, %c0_11] : memref<128x128xf32, #tpu.memory_space<vmem>>, vector<128x128xf32>
      %c0_12 = arith.constant 0 : index
      %c0_13 = arith.constant 0 : index
      %13 = vector.load %arg5[%c0_12, %c0_13] : memref<1x128xf32, #tpu.memory_space<vmem>>, vector<1x128xf32>
      %14 = vector.broadcast %13 : vector<1x128xf32> to vector<128x128xf32>
      %15 = arith.addf %12, %14 : vector<128x128xf32>
      %cst_14 = arith.constant 0.000000e+00 : f32
      %16 = vector.broadcast %cst_14 : f32 to vector<128x128xf32>
      %17 = arith.maximumf %15, %16 : vector<128x128xf32>
      %c0_15 = arith.constant 0 : index
      %c0_16 = arith.constant 0 : index
      %18 = vector.load %arg6[%c0_15, %c0_16] : memref<128x128xf32, #tpu.memory_space<vmem>>, vector<128x128xf32>
      tpu.vector_store %arg6[%c0_15, %c0_16], %17 {strides = array<i32>} : memref<128x128xf32, #tpu.memory_space<vmem>>, vector<128x128xf32>,
    } else {
    }
    return
  }
  func.func @transform_0(%arg0: i32, %arg1: i32, %arg2: i32) -> (i32, i32) {
    %c0_i32 = arith.constant 0 : i32
    return %arg0, %arg2 : i32, i32
  }
  func.func @transform_1(%arg0: i32, %arg1: i32, %arg2: i32) -> (i32, i32) {
    %c0_i32 = arith.constant 0 : i32
    return %arg2, %arg1 : i32, i32
  }
  func.func @transform_2(%arg0: i32, %arg1: i32, %arg2: i32) -> (i32, i32) {
    %c0_i32 = arith.constant 0 : i32
    %c0_i32_0 = arith.constant 0 : i32
    return %c0_i32, %arg1 : i32, i32
  }
  func.func @transform_3(%arg0: i32, %arg1: i32, %arg2: i32) -> (i32, i32) {
    %c0_i32 = arith.constant 0 : i32
    return %arg0, %arg1 : i32, i32
  }
}

</mosaic_0001>

<bundles_post_ra>
// kernel: tpu_custom_call.1
= control target key start
LH: loop header
LB: loop body
LE: loop exit
PB: predicated region body
PF: predicated region fallthrough
CT: control target
= control target key end

     0   :  { %8 = vsyncpa [#allocation4], 0  ;;  %s715_s0 = inlined_call_operand.hbm [shape: f32[128,32], index: 0, kind: input, shape index: {}]   ;;  %s716_s1 = inlined_call_operand.hbm [shape: f32[32,128], index: 1, kind: input, shape index: {}]   ;;  %s717_s2 = inlined_call_operand.hbm [shape: f32[1,128], index: 2, kind: input, shape index: {}]   ;;  %s718_s3 = inlined_call_operand.hbm [shape: f32[128,128], index: 3, kind: output, shape index: {}]  }
   0x1   :  { %9 = vsyncpa [#allocation7], 0 }
   0x2   :  { %10 = vsyncpa [#allocation5], 0  ;;  %s609_s12 = smov [#allocation6]   ;;  %s610_s14 = smov [#allocation3]  }
   0x3   :  { %s28_s13 = sshll.u32 %s609_s12, 4  ;;  %s16_s15 = sshll.u32 %s610_s14, 4  ;;  %s29_s13 = int_to_ptr.vmem [resolvable:$true] %s28_s13  ;;  %s635_s15 = int_to_ptr.vmem [resolvable:$true] %s16_s15 }
   0x4   :  { %s515_s18 = scalar_lea.hbm %s716_s1, 512 }
   0x5   :  { %p516_p0 = scmp.ne.s32.totalorder %s716_s1, %s515_s18  ;;  %p519_p1 = scmp.lt.u32.totalorder %s515_s18, %s716_s1 }
   0x7   :  { %p521_p2 = pnand %p519_p1, %p516_p0 }
   0x9   :  { %524 = shalt.err (!%p521_p2)
}
   0xa   :  { %s525_s23 = scalar_lea.vmem %s29_s13, 512  ;;  %p530_p4 = scmp.lt.s32.totalorder %s29_s13, %s29_s13 }
   0xb   :  { %p526_p3 = scmp.ne.s32.totalorder %s29_s13, %s525_s23  ;;  %p531_p5 = scmp.lt.s32.totalorder %s525_s23, %s525_s23 }
   0xd   :  { %p532_p6 = por %p531_p5, %p530_p4 }
   0xf   :  { %p533_p7 = pnand %p532_p6, %p526_p3 }
  0x11   :  { %536 = shalt.err (!%p533_p7)
}
  0x12   :  { %s611_s24 = smov 128   ;;  %s612_s25 = smov 8  }
  0x13   :  { %34 = dma.hbm_to_vmem [thread:$0]  %s716_s1, 512, %s29_s13, [#allocation7], %s611_s24, %s611_s24, %s612_s25  }
  0x14   :  { %s537_s30 = scalar_lea.hbm %s715_s0, 2048 }
  0x15   :  { %p538_p8 = scmp.ne.s32.totalorder %s715_s0, %s537_s30  ;;  %p541_p9 = scmp.lt.u32.totalorder %s537_s30, %s715_s0 }
  0x17   :  { %p543_p10 = pnand %p541_p9, %p538_p8 }
  0x19   :  { %546 = shalt.err (!%p543_p10)
}
  0x1a   :  { %s547_s8 = scalar_lea.vmem %s635_s15, 2048  ;;  %p552_p12 = scmp.lt.s32.totalorder %s635_s15, %s635_s15 }
  0x1b   :  { %p548_p11 = scmp.ne.s32.totalorder %s635_s15, %s547_s8  ;;  %p553_p13 = scmp.lt.s32.totalorder %s547_s8, %s547_s8 }
  0x1d   :  { %p554_p0 = por %p553_p13, %p552_p12 }
  0x1f   :  { %p555_p1 = pnand %p554_p0, %p548_p11 }
  0x21   :  { %558 = shalt.err (!%p555_p1)
}
  0x22   :  { %22 = dma.hbm_to_vmem [thread:$0]  %s715_s0, 2048, %s635_s15, [#allocation4], %s611_s24, %s611_s24, %s612_s25  }
  0x23   :  { %s613_s10 = smov [#allocation8]   ;;  %s559_s14 = scalar_lea.hbm %s717_s2, 16 }
  0x24   :  { %s41_s11 = sshll.u32 %s613_s10, 4  ;;  %p560_p2 = scmp.ne.s32.totalorder %s717_s2, %s559_s14  ;;  %s42_s11 = int_to_ptr.vmem [resolvable:$true] %s41_s11 }
  0x25   :  { %p563_p3 = scmp.lt.u32.totalorder %s559_s14, %s717_s2 }
  0x27   :  { %p565_p4 = pnand %p563_p3, %p560_p2 }
  0x29   :  { %568 = shalt.err (!%p565_p4)
}
  0x2a   :  { %s569_s20 = scalar_lea.vmem %s42_s11, 16  ;;  %s573_s0 = scalar_lea.vmem %s42_s11, 32 }
  0x2b   :  { %p570_p5 = scmp.ne.s32.totalorder %s42_s11, %s569_s20  ;;  %p574_p6 = scmp.lt.s32.totalorder %s42_s11, %s42_s11 }
  0x2c   :  { %p575_p7 = scmp.lt.s32.totalorder %s573_s0, %s569_s20 }
  0x2e   :  { %p576_p8 = por %p575_p7, %p574_p6 }
  0x30   :  { %p577_p9 = pnand %p576_p8, %p570_p5 }
  0x32   :  { %580 = shalt.err (!%p577_p9)
}
  0x33   :  { %44 = dma.hbm_to_vmem [thread:$0]  %s717_s2, 16, %s42_s11, [#allocation7]  }
  0x34   :  { %603 = dma.done.wait [#allocation4], 2048  }
  0x35   :  { %604 = vsyncadd [#allocation4], 4294965248 }
  0x36   :  { %605 = dma.done.wait [#allocation7], 528  }
  0x37   :  { %606 = vsyncadd [#allocation7], 4294966768  ;;  %vm110_vm0 = vcmask 261120   ;;  %v106_v0 = vld [vmem:[#allocation6] sm:$0xff]  ;;  %v107_v1 = vld [vmem:[#allocation6 + $0x8] sm:$0xff]  ;;  %s614_s2 = smov [#allocation9]  }
  0x38   :  { %v108_v2 = vld [vmem:[#allocation6 + $0x10] sm:$0xff]  ;;  %v497_v3 = vpack.c.bf16 %v107_v1, %v106_v0  ;;  %v109_v4 = vld [vmem:[#allocation6 + $0x18] sm:$0xff]  ;;  %v90_v5 = vld [vmem:[#allocation3] sm:$0xff]  ;;  %s415_s22 = sshll.u32 %s614_s2, 4  ;;  %s416_s22 = int_to_ptr.vmem [resolvable:$true] %s415_s22 }
  0x39   :  { %v98_v6 = vld [vmem:[#allocation3 + $0x40] sm:$0xff]  ;;  %v501_v7 = vpack.c.bf16 %v109_v4, %v108_v2  ;;  %473 = vmatprep.mubr.msk.f32.mxu0 %vm110_vm0, %v90_v5  ;;  %v91_v8 = vld [vmem:[#allocation3 + $0x8] sm:$0xff]  ;;  %v92_v10 = vld [vmem:[#allocation3 + $0x10] sm:$0xff]  ;;  %s581_s23 = scalar_lea.vmem %s416_s22, 2048  ;;  %p586_p11 = scmp.lt.s32.totalorder %s416_s22, %s416_s22 }
  0x3a   :  { %485 = vmatprep.mubr.msk.f32.mxu1 %vm110_vm0, %v98_v6  ;;  %498 = vmatprep.subr.bf16.mxu0 %v497_v3  ;;  %v99_v9 = vld [vmem:[#allocation3 + $0x48] sm:$0xff]  ;;  %v100_v11 = vld [vmem:[#allocation3 + $0x50] sm:$0xff]  ;;  %v93_v12 = vld [vmem:[#allocation3 + $0x18] sm:$0xff]  ;;  %p582_p10 = scmp.ne.s32.totalorder %s416_s22, %s581_s23  ;;  %p587_p12 = scmp.lt.s32.totalorder %s581_s23, %s581_s23 }
  0x3b   :  { %505 = vmatprep.subr.bf16.mxu1 %v497_v3  ;;  %500 = vmatpush3.bf16.msra.mxu0 %v497_v3  ;;  %v101_v13 = vld [vmem:[#allocation3 + $0x58] sm:$0xff]  ;;  %v94_v14 = vld [vmem:[#allocation3 + $0x20] sm:$0xff]  ;;  %v95_v16 = vld [vmem:[#allocation3 + $0x28] sm:$0xff] }
  0x3c   :  { %507 = vmatpush3.bf16.msra.mxu1 %v497_v3  ;;  %502 = vmatprep.subr.bf16.mxu0 %v501_v7  ;;  %v102_v15 = vld [vmem:[#allocation3 + $0x60] sm:$0xff]  ;;  %v103_v17 = vld [vmem:[#allocation3 + $0x68] sm:$0xff]  ;;  %v96_v18 = vld [vmem:[#allocation3 + $0x30] sm:$0xff]  ;;  %p588_p13 = por %p587_p12, %p586_p11 }
  0x3d   :  { %506 = vmatprep.subr.bf16.mxu1 %v501_v7  ;;  %v104_v19 = vld [vmem:[#allocation3 + $0x70] sm:$0xff]  ;;  %v97_v20 = vld [vmem:[#allocation3 + $0x38] sm:$0xff]  ;;  %v444_v22 = vld [vmem:[#allocation8] ss:$0 sm:$0xff] }
  0x3e   :  { %v105_v21 = vld [vmem:[#allocation3 + $0x78] sm:$0xff]  ;;  %p589_p0 = pnand %p588_p13, %p582_p10 }
  0x3f   :  { %504 = vmatpush3.bf16.msra.mxu0 %v501_v7 }
  0x40   :  { %508 = vmatpush3.bf16.msra.mxu1 %v501_v7 }
  0x42   :  { %474 = vmatmul.mubr.msk.f32.vlgmr.msra.gmra.mrb[0].mxu0 %vm110_vm0, %v91_v8 }
  0x43   :  { %486 = vmatmul.mubr.msk.f32.vlgmr.msra.gmra.mrb[0].mxu1 %vm110_vm0, %v99_v9  ;;  %476 = vmatprep.mubr.msk.f32.mxu0 %vm110_vm0, %v92_v10 }
  0x44   :  { %488 = vmatprep.mubr.msk.f32.mxu1 %vm110_vm0, %v100_v11 }
  0x46   :  { %477 = vmatmul.mubr.msk.f32.gmra.mrb[2].mxu0 %vm110_vm0, %v93_v12 }
  0x47   :  { %489 = vmatmul.mubr.msk.f32.gmra.mrb[2].mxu1 %vm110_vm0, %v101_v13  ;;  %479 = vmatprep.mubr.msk.f32.mxu0 %vm110_vm0, %v94_v14 }
  0x48   :  { %491 = vmatprep.mubr.msk.f32.mxu1 %vm110_vm0, %v102_v15 }
  0x4a   :  { %480 = vmatmul.mubr.msk.f32.gmra.mrb[4].mxu0 %vm110_vm0, %v95_v16 }
  0x4b   :  { %492 = vmatmul.mubr.msk.f32.gmra.mrb[4].mxu1 %vm110_vm0, %v103_v17  ;;  %482 = vmatprep.mubr.msk.f32.mxu0 %vm110_vm0, %v96_v18 }
  0x4c   :  { %494 = vmatprep.mubr.msk.f32.mxu1 %vm110_vm0, %v104_v19 }
  0x4e   :  { %483 = vmatmul.mubr.msk.f32.gmra.mrb[6].mxu0 %vm110_vm0, %v97_v20 }
  0x4f   :  { %495 = vmatmul.mubr.msk.f32.gmra.mrb[6].mxu1 %vm110_vm0, %v105_v21 }
 0x115   :  { %v475_v23 = vpop.f32.mrb[0].mxu0 }
 0x116   :  { %v487_v24 = vpop.f32.mrb[0].mxu1  ;;  %v363_v25 = vadd.f32 %v475_v23, %v444_v22  ;;  %v225_v27 = vpop.f32.mrb[1].mxu0 }
 0x117   :  { %v371_v26 = vadd.f32 %v487_v24, %v444_v22  ;;  %v265_v28 = vpop.f32.mrb[1].mxu1  ;;  %v362_v29 = vadd.f32 %v444_v22, %v225_v27 }
 0x118   :  { %v370_v30 = vadd.f32 %v444_v22, %v265_v28  ;;  %v379_v31 = vmax.f32 %v363_v25, 0.0 }
 0x119   :  { %v387_v32 = vmax.f32 %v371_v26, 0.0  ;;  %v378_v33 = vmax.f32 %v362_v29, 0.0  ;;  %v478_v35 = vpop.f32.mrb[2].mxu0 }
 0x11a   :  { %v386_v34 = vmax.f32 %v370_v30, 0.0  ;;  %v490_v36 = vpop.f32.mrb[2].mxu1  ;;  %395 = vst [vmem:[#allocation9 + $0x8] sm:$0xff] %v379_v31  ;;  %v365_v37 = vadd.f32 %v478_v35, %v444_v22  ;;  %v235_v39 = vpop.f32.mrb[3].mxu0 }
 0x11b   :  { %403 = vst [vmem:[#allocation9 + $0x48] sm:$0xff] %v387_v32  ;;  %v373_v38 = vadd.f32 %v490_v36, %v444_v22  ;;  %v275_v40 = vpop.f32.mrb[3].mxu1  ;;  %394 = vst [vmem:[#allocation9] sm:$0xff] %v378_v33  ;;  %v364_v41 = vadd.f32 %v444_v22, %v235_v39 }
 0x11c   :  { %402 = vst [vmem:[#allocation9 + $0x40] sm:$0xff] %v386_v34  ;;  %v372_v42 = vadd.f32 %v444_v22, %v275_v40  ;;  %v381_v43 = vmax.f32 %v365_v37, 0.0 }
 0x11d   :  { %v389_v44 = vmax.f32 %v373_v38, 0.0  ;;  %v380_v45 = vmax.f32 %v364_v41, 0.0  ;;  %v481_v47 = vpop.f32.mrb[4].mxu0 }
 0x11e   :  { %v388_v46 = vmax.f32 %v372_v42, 0.0  ;;  %v493_v48 = vpop.f32.mrb[4].mxu1  ;;  %397 = vst [vmem:[#allocation9 + $0x18] sm:$0xff] %v381_v43  ;;  %v367_v49 = vadd.f32 %v481_v47, %v444_v22  ;;  %v245_v51 = vpop.f32.mrb[5].mxu0 }
 0x11f   :  { %405 = vst [vmem:[#allocation9 + $0x58] sm:$0xff] %v389_v44  ;;  %v375_v50 = vadd.f32 %v493_v48, %v444_v22  ;;  %v285_v52 = vpop.f32.mrb[5].mxu1  ;;  %396 = vst [vmem:[#allocation9 + $0x10] sm:$0xff] %v380_v45  ;;  %v366_v53 = vadd.f32 %v444_v22, %v245_v51 }
 0x120   :  { %404 = vst [vmem:[#allocation9 + $0x50] sm:$0xff] %v388_v46  ;;  %v374_v54 = vadd.f32 %v444_v22, %v285_v52  ;;  %v383_v55 = vmax.f32 %v367_v49, 0.0 }
 0x121   :  { %v391_v56 = vmax.f32 %v375_v50, 0.0  ;;  %v382_v57 = vmax.f32 %v366_v53, 0.0  ;;  %v484_v59 = vpop.f32.mrb[6].mxu0 }
 0x122   :  { %v390_v58 = vmax.f32 %v374_v54, 0.0  ;;  %v496_v60 = vpop.f32.mrb[6].mxu1  ;;  %399 = vst [vmem:[#allocation9 + $0x28] sm:$0xff] %v383_v55  ;;  %v369_v61 = vadd.f32 %v484_v59, %v444_v22  ;;  %v255_v63 = vpop.f32.mrb[7].mxu0 }
 0x123   :  { %407 = vst [vmem:[#allocation9 + $0x68] sm:$0xff] %v391_v56  ;;  %v377_v62 = vadd.f32 %v496_v60, %v444_v22  ;;  %v295_v0 = vpop.f32.mrb[7].mxu1  ;;  %398 = vst [vmem:[#allocation9 + $0x20] sm:$0xff] %v382_v57  ;;  %v368_v1 = vadd.f32 %v444_v22, %v255_v63 }
 0x124   :  { %406 = vst [vmem:[#allocation9 + $0x60] sm:$0xff] %v390_v58  ;;  %v376_v2 = vadd.f32 %v444_v22, %v295_v0  ;;  %v385_v3 = vmax.f32 %v369_v61, 0.0 }
 0x125   :  { %v393_v4 = vmax.f32 %v377_v62, 0.0  ;;  %v384_v5 = vmax.f32 %v368_v1, 0.0 }
 0x126   :  { %v392_v6 = vmax.f32 %v376_v2, 0.0  ;;  %401 = vst [vmem:[#allocation9 + $0x38] sm:$0xff] %v385_v3 }
 0x127   :  { %409 = vst [vmem:[#allocation9 + $0x78] sm:$0xff] %v393_v4  ;;  %400 = vst [vmem:[#allocation9 + $0x30] sm:$0xff] %v384_v5 }
 0x128   :  { %408 = vst [vmem:[#allocation9 + $0x70] sm:$0xff] %v392_v6 }
 0x129   :  { %592 = shalt.err (!%p589_p0)
}
 0x12a   :  { %s593_s28 = scalar_lea.hbm %s718_s3, 2048 }
 0x12b   :  { %p594_p1 = scmp.ne.s32.totalorder %s718_s3, %s593_s28  ;;  %p597_p2 = scmp.lt.u32.totalorder %s593_s28, %s718_s3 }
 0x12d   :  { %p599_p3 = pnand %p597_p2, %p594_p1 }
 0x12f   :  { %602 = shalt.err (!%p599_p3)
}
 0x130   :  { %421 = dma.vmem_to_hbm [thread:$0]  %s416_s22, 2048, %s718_s3, [#allocation5], %s611_s24, %s611_s24, %s612_s25  }
 0x131   :  { %607 = dma.done.wait [#allocation5], 2048  }
 0x132   :  { %608 = vsyncadd [#allocation5], 4294965248 }
 0x133   :  { %425 = vsyncpa [#allocation4], 1 }
 0x134   :  { %426 = vsyncpa [#allocation7], 1 }
 0x135   :  { %427 = vsyncpa [#allocation5], 1 }

</bundles_post_ra>
